<compile_context>
chip_gen: v7x
topology: tpu7x:2x2x1
jax: 0.10.0
libtpu: 0.0.40
codegen_flags: <defaults>
</compile_context>

<pallas_src>
import functools

import jax
import jax.numpy as jnp
from jax import lax
from jax.experimental import pallas as pl
from jax.experimental.pallas import tpu as pltpu

EPS = 1e-6


def _cdiv(a, b):
    return (a + b - 1) // b


def _round_up(a, b):
    return _cdiv(a, b) * b


def _hw_config():
    """Per-generation (target_block_bytes, vmem_limit_bytes, num_splits)."""
    try:
        info = pltpu.get_tpu_info()
        vmem = int(getattr(info, "vmem_capacity_bytes", 0)) or None
    except Exception:
        vmem = None
    if vmem is None:
        # Unknown chip: safe everywhere (2 inputs x 2 buffers x 6 MiB = 24 MiB).
        return 6 * 1024 * 1024, 40 * 1024 * 1024, 1
    if vmem <= 80 * 1024 * 1024:
        # v7x-class: 64 MiB VMEM per TC, 2 TensorCores, 3.2 TB/s HBM.
        return 8 * 1024 * 1024, 48 * 1024 * 1024, 2
    # v5e / v6e: 128 MiB VMEM, single TensorCore.
    return 12 * 1024 * 1024, 64 * 1024 * 1024, 1


# ---------------------------------------------------------------------------
# Lane-dense (B, R, 128) kernel, grid = (split, row_tile)
# ---------------------------------------------------------------------------
def _dice_rows_kernel(pred_ref, gt_ref, inter_ref, sum_ref, inter_acc, sum_acc,
                      *, total_rows, tile_rows, tiles_per_split, full_tiles,
                      need_mask):
    s = pl.program_id(0)
    k = pl.program_id(1)

    @pl.when(k == 0)
    def _():
        inter_acc[...] = jnp.zeros_like(inter_acc)
        sum_acc[...] = jnp.zeros_like(sum_acc)

    b = pred_ref.shape[0]
    slabs = tile_rows // 8

    # TODO(synk): optional MXU-offloaded slab reduce (einsum with a ones
    # vector) for bf16 on v7x; the pure-VALU path below is HBM-bound for f32.
    def accumulate(p, g):
        # (B, tile_rows, 128) -> (B, tile_rows//8, 8, 128): tile-aligned view.
        p4 = p.reshape(b, slabs, 8, 128)
        g4 = g.reshape(b, slabs, 8, 128)
        # Plain vreg adds into a vreg-dense (B, 8, 128) accumulator; the
        # 8->1 / 128->1 reduces are deferred to the wrapper partials.
        inter_acc[...] += jnp.sum(p4 * g4, axis=1)
        sum_acc[...] += jnp.sum(p4 + g4, axis=1)

    if need_mask:
        t = s * tiles_per_split + k  # un-clamped logical tile index

        @pl.when(t < full_tiles)
        def _():  # fast body: full tiles, no mask ops
            accumulate(pred_ref[...].astype(jnp.float32),
                       gt_ref[...].astype(jnp.float32))

        @pl.when(t >= full_tiles)
        def _():  # ragged last tile and dead clamped split iterations
            # `where` (not multiply) so unspecified padding is replaced,
            # never propagated.
            row = t * tile_rows + lax.broadcasted_iota(
                jnp.int32, (1, tile_rows, 128), 1)
            valid = row < total_rows
            p = jnp.where(valid, pred_ref[...].astype(jnp.float32), 0.0)
            g = jnp.where(valid, gt_ref[...].astype(jnp.float32), 0.0)
            accumulate(p, g)
    else:
        accumulate(pred_ref[...].astype(jnp.float32),
                   gt_ref[...].astype(jnp.float32))

    @pl.when(k == tiles_per_split - 1)
    def _():
        inter_ref[...] = inter_acc[...][None]
        sum_ref[...] = sum_acc[...][None]


def _dice_partials_rows(pred3, gt3, *, target_block_bytes, vmem_limit_bytes,
                        num_splits):
    b, r, _ = pred3.shape
    itemsize = max(pred3.dtype.itemsize, gt3.dtype.itemsize)
    # Sublane multiple honouring packed layouts (f32: 8, bf16: 16, int8: 32).
    sub_mult = 8 * max(1, 4 // itemsize)

    tile_rows = target_block_bytes // (b * 128 * itemsize)
    tile_rows = max(sub_mult, (tile_rows // sub_mult) * sub_mult)
    tile_rows = min(tile_rows, _round_up(r, sub_mult))

    num_tiles = _cdiv(r, tile_rows)
    n_split = max(1, min(num_splits, num_tiles))       # both TCs on v7x
    tiles_per_split = _cdiv(num_tiles, n_split)
    need_mask = (n_split * tiles_per_split * tile_rows != r)
    clamp = n_split * tiles_per_split > num_tiles
    full_tiles = r // tile_rows

    def in_idx(s, k):
        t = s * tiles_per_split + k
        if clamp:
            t = jnp.minimum(t, num_tiles - 1)
        return (0, t, 0)

    out_idx = lambda s, k: (s, 0, 0, 0)

    kernel = functools.partial(
        _dice_rows_kernel,
        total_rows=r, tile_rows=tile_rows, tiles_per_split=tiles_per_split,
        full_tiles=full_tiles, need_mask=need_mask)

    inter_p, sum_p = pl.pallas_call(
        kernel,
        out_shape=(jax.ShapeDtypeStruct((n_split, b, 8, 128), jnp.float32),
                   jax.ShapeDtypeStruct((n_split, b, 8, 128), jnp.float32)),
        grid_spec=pltpu.PrefetchScalarGridSpec(
            num_scalar_prefetch=0,
            grid=(n_split, tiles_per_split),
            in_specs=[pl.BlockSpec((b, tile_rows, 128), in_idx),
                      pl.BlockSpec((b, tile_rows, 128), in_idx)],
            out_specs=[pl.BlockSpec((1, b, 8, 128), out_idx),
                       pl.BlockSpec((1, b, 8, 128), out_idx)],
            scratch_shapes=[pltpu.VMEM((b, 8, 128), jnp.float32),
                            pltpu.VMEM((b, 8, 128), jnp.float32)],
        ),
        compiler_params=pltpu.CompilerParams(
            dimension_semantics=("parallel", "arbitrary"),
            vmem_limit_bytes=vmem_limit_bytes,
        ),
    )(pred3, gt3)

    inter_b = jnp.sum(inter_p, axis=(0, 2, 3))
    union_b = jnp.sum(sum_p, axis=(0, 2, 3))
    return inter_b, union_b


# ---------------------------------------------------------------------------
# Public wrapper: matches PyTorch DiceLoss.forward semantics.
# ---------------------------------------------------------------------------
def dice_loss(pred, gt, *, target_block_bytes=None, vmem_limit_bytes=None,
              num_splits=None):
    assert pred.shape == gt.shape
    cfg_blk, cfg_vlim, cfg_splits = _hw_config()
    target_block_bytes = target_block_bytes or cfg_blk
    vmem_limit_bytes = vmem_limit_bytes or cfg_vlim
    num_splits = num_splits or cfg_splits

    b = pred.shape[0]
    pred2 = pred.reshape(b, -1)
    gt2 = gt.reshape(b, -1)
    n = pred2.shape[1]
    n_floor = (n // 128) * 128

    if n_floor == 0:
        # Tiny input: kernel launch overhead dominates; plain JAX.
        p = pred2.astype(jnp.float32)
        g = gt2.astype(jnp.float32)
        inter_b = jnp.sum(p * g, axis=1)
        union_b = jnp.sum(p + g, axis=1)
    else:
        pmain = pred2 if n_floor == n else pred2[:, :n_floor]
        gmain = gt2 if n_floor == n else gt2[:, :n_floor]
        r = n_floor // 128
        inter_b, union_b = _dice_partials_rows(
            pmain.reshape(b, r, 128), gmain.reshape(b, r, 128),
            target_block_bytes=target_block_bytes,
            vmem_limit_bytes=vmem_limit_bytes,
            num_splits=num_splits)
        if n_floor != n:
            # <128-element per-batch ragged tail, folded in with plain JAX.
            pt = pred2[:, n_floor:].astype(jnp.float32)
            gt_tail = gt2[:, n_floor:].astype(jnp.float32)
            inter_b = inter_b + jnp.sum(pt * gt_tail, axis=1)
            union_b = union_b + jnp.sum(pt + gt_tail, axis=1)

    dice = (2.0 * inter_b + EPS) / (union_b + EPS)
    return jnp.mean(1.0 - dice)


def dice_loss_ref(pred, gt):
    b = pred.shape[0]
    p = pred.reshape(b, -1).astype(jnp.float32)
    g = gt.reshape(b, -1).astype(jnp.float32)
    inter = jnp.sum(p * g, axis=1)
    union = jnp.sum(p, axis=1) + jnp.sum(g, axis=1)
    dice = (2.0 * inter + EPS) / (union + EPS)
    return jnp.mean(1.0 - dice)


if __name__ == "__main__":
    key = jax.random.PRNGKey(0)
    k1, k2 = jax.random.split(key)

    # NCHW-like inputs: batch=2, channels=4, spatial=16x16
    pred = jax.nn.sigmoid(jax.random.normal(k1, (2, 4, 16, 16), dtype=jnp.float32))
    gt = (jax.random.uniform(k2, (2, 4, 16, 16)) > 0.5).astype(jnp.float32)

    loss = jax.block_until_ready(dice_loss(pred, gt))
    ref = jax.block_until_ready(dice_loss_ref(pred, gt))

    assert jnp.allclose(loss, ref, atol=1e-5, rtol=1e-5), (loss, ref)
    print("KERNEL_OK")
</pallas_src>

<mosaic_0001>
module attributes {stable_mosaic.version = 11 : i64} {
  func.func @_dice_rows_kernel(%arg0: i32, %arg1: i32, %arg2: memref<2x8x128xf32, #tpu.memory_space<vmem>>, %arg3: memref<2x8x128xf32, #tpu.memory_space<vmem>>, %arg4: memref<1x2x8x128xf32, #tpu.memory_space<vmem>>, %arg5: memref<1x2x8x128xf32, #tpu.memory_space<vmem>>, %arg6: memref<2x8x128xf32, #tpu.memory_space<vmem>>, %arg7: memref<2x8x128xf32, #tpu.memory_space<vmem>>) attributes {dimension_semantics = [#tpu.dimension_semantics<parallel>, #tpu.dimension_semantics<arbitrary>], iteration_bounds = array<i64: 1, 1>, scalar_prefetch = 0 : i64, scratch_operands = 2 : i64, tpu.core_type = #tpu.core_type<tc>, window_params = [{transform_indices = @transform_0, window_bounds = array<i64: 2, 8, 128>}, {transform_indices = @transform_1, window_bounds = array<i64: 2, 8, 128>}, {transform_indices = @transform_2, window_bounds = array<i64: 1, 2, 8, 128>}, {transform_indices = @transform_3, window_bounds = array<i64: 1, 2, 8, 128>}]} {
    %c0_i32 = arith.constant 0 : i32
    %0 = arith.cmpi eq, %arg1, %c0_i32 : i32
    %1 = arith.extui %0 : i1 to i32
    %c0_i32_0 = arith.constant 0 : i32
    %2 = arith.cmpi ne, %1, %c0_i32_0 : i32
    scf.if %2 {
      %cst_21 = arith.constant 0.000000e+00 : f32
      %20 = vector.broadcast %cst_21 : f32 to vector<2x8x128xf32>
      %c0_22 = arith.constant 0 : index
      %c0_23 = arith.constant 0 : index
      %c0_24 = arith.constant 0 : index
      %21 = vector.load %arg6[%c0_22, %c0_23, %c0_24] : memref<2x8x128xf32, #tpu.memory_space<vmem>>, vector<2x8x128xf32>
      tpu.vector_store %arg6[%c0_22, %c0_23, %c0_24], %20 {strides = array<i32>} : memref<2x8x128xf32, #tpu.memory_space<vmem>>, vector<2x8x128xf32>,
      %cst_25 = arith.constant 0.000000e+00 : f32
      %22 = vector.broadcast %cst_25 : f32 to vector<2x8x128xf32>
      %c0_26 = arith.constant 0 : index
      %c0_27 = arith.constant 0 : index
      %c0_28 = arith.constant 0 : index
      %23 = vector.load %arg7[%c0_26, %c0_27, %c0_28] : memref<2x8x128xf32, #tpu.memory_space<vmem>>, vector<2x8x128xf32>
      tpu.vector_store %arg7[%c0_26, %c0_27, %c0_28], %22 {strides = array<i32>} : memref<2x8x128xf32, #tpu.memory_space<vmem>>, vector<2x8x128xf32>,
    } else {
    }
    %c0 = arith.constant 0 : index
    %c0_1 = arith.constant 0 : index
    %c0_2 = arith.constant 0 : index
    %3 = vector.load %arg2[%c0, %c0_1, %c0_2] : memref<2x8x128xf32, #tpu.memory_space<vmem>>, vector<2x8x128xf32>
    %c0_3 = arith.constant 0 : index
    %c0_4 = arith.constant 0 : index
    %c0_5 = arith.constant 0 : index
    %4 = vector.load %arg3[%c0_3, %c0_4, %c0_5] : memref<2x8x128xf32, #tpu.memory_space<vmem>>, vector<2x8x128xf32>
    %5 = vector.shape_cast %3 : vector<2x8x128xf32> to vector<2x1x8x128xf32>
    %6 = vector.shape_cast %4 : vector<2x8x128xf32> to vector<2x1x8x128xf32>
    %c0_6 = arith.constant 0 : index
    %c0_7 = arith.constant 0 : index
    %c0_8 = arith.constant 0 : index
    %7 = vector.load %arg6[%c0_6, %c0_7, %c0_8] : memref<2x8x128xf32, #tpu.memory_space<vmem>>, vector<2x8x128xf32>
    %8 = arith.mulf %5, %6 : vector<2x1x8x128xf32>
    %cst = arith.constant dense<0.000000e+00> : vector<2x8x128xf32>
    %9 = vector.multi_reduction <add>, %8, %cst [1] : vector<2x1x8x128xf32> to vector<2x8x128xf32>
    %10 = arith.addf %7, %9 : vector<2x8x128xf32>
    %c0_9 = arith.constant 0 : index
    %c0_10 = arith.constant 0 : index
    %c0_11 = arith.constant 0 : index
    %11 = vector.load %arg6[%c0_9, %c0_10, %c0_11] : memref<2x8x128xf32, #tpu.memory_space<vmem>>, vector<2x8x128xf32>
    tpu.vector_store %arg6[%c0_9, %c0_10, %c0_11], %10 {strides = array<i32>} : memref<2x8x128xf32, #tpu.memory_space<vmem>>, vector<2x8x128xf32>,
    %c0_12 = arith.constant 0 : index
    %c0_13 = arith.constant 0 : index
    %c0_14 = arith.constant 0 : index
    %12 = vector.load %arg7[%c0_12, %c0_13, %c0_14] : memref<2x8x128xf32, #tpu.memory_space<vmem>>, vector<2x8x128xf32>
    %13 = arith.addf %5, %6 : vector<2x1x8x128xf32>
    %cst_15 = arith.constant dense<0.000000e+00> : vector<2x8x128xf32>
    %14 = vector.multi_reduction <add>, %13, %cst_15 [1] : vector<2x1x8x128xf32> to vector<2x8x128xf32>
    %15 = arith.addf %12, %14 : vector<2x8x128xf32>
    %c0_16 = arith.constant 0 : index
    %c0_17 = arith.constant 0 : index
    %c0_18 = arith.constant 0 : index
    %16 = vector.load %arg7[%c0_16, %c0_17, %c0_18] : memref<2x8x128xf32, #tpu.memory_space<vmem>>, vector<2x8x128xf32>
    tpu.vector_store %arg7[%c0_16, %c0_17, %c0_18], %15 {strides = array<i32>} : memref<2x8x128xf32, #tpu.memory_space<vmem>>, vector<2x8x128xf32>,
    %c0_i32_19 = arith.constant 0 : i32
    %17 = arith.cmpi eq, %arg1, %c0_i32_19 : i32
    %18 = arith.extui %17 : i1 to i32
    %c0_i32_20 = arith.constant 0 : i32
    %19 = arith.cmpi ne, %18, %c0_i32_20 : i32
    scf.if %19 {
      %c0_21 = arith.constant 0 : index
      %c0_22 = arith.constant 0 : index
      %c0_23 = arith.constant 0 : index
      %20 = vector.load %arg6[%c0_21, %c0_22, %c0_23] : memref<2x8x128xf32, #tpu.memory_space<vmem>>, vector<2x8x128xf32>
      %21 = vector.shape_cast %20 : vector<2x8x128xf32> to vector<1x2x8x128xf32>
      %c0_24 = arith.constant 0 : index
      %c0_25 = arith.constant 0 : index
      %c0_26 = arith.constant 0 : index
      %c0_27 = arith.constant 0 : index
      %22 = vector.load %arg4[%c0_24, %c0_25, %c0_26, %c0_27] : memref<1x2x8x128xf32, #tpu.memory_space<vmem>>, vector<1x2x8x128xf32>
      tpu.vector_store %arg4[%c0_24, %c0_25, %c0_26, %c0_27], %21 {strides = array<i32>} : memref<1x2x8x128xf32, #tpu.memory_space<vmem>>, vector<1x2x8x128xf32>,
      %c0_28 = arith.constant 0 : index
      %c0_29 = arith.constant 0 : index
      %c0_30 = arith.constant 0 : index
      %23 = vector.load %arg7[%c0_28, %c0_29, %c0_30] : memref<2x8x128xf32, #tpu.memory_space<vmem>>, vector<2x8x128xf32>
      %24 = vector.shape_cast %23 : vector<2x8x128xf32> to vector<1x2x8x128xf32>
      %c0_31 = arith.constant 0 : index
      %c0_32 = arith.constant 0 : index
      %c0_33 = arith.constant 0 : index
      %c0_34 = arith.constant 0 : index
      %25 = vector.load %arg5[%c0_31, %c0_32, %c0_33, %c0_34] : memref<1x2x8x128xf32, #tpu.memory_space<vmem>>, vector<1x2x8x128xf32>
      tpu.vector_store %arg5[%c0_31, %c0_32, %c0_33, %c0_34], %24 {strides = array<i32>} : memref<1x2x8x128xf32, #tpu.memory_space<vmem>>, vector<1x2x8x128xf32>,
    } else {
    }
    return
  }
  func.func @transform_0(%arg0: i32, %arg1: i32) -> (i32, i32, i32) {
    %c1_i32 = arith.constant 1 : i32
    %0 = arith.muli %arg0, %c1_i32 : i32
    %1 = arith.addi %0, %arg1 : i32
    %c0_i32 = arith.constant 0 : i32
    %c0_i32_0 = arith.constant 0 : i32
    %c0_i32_1 = arith.constant 0 : i32
    return %c0_i32, %1, %c0_i32_0 : i32, i32, i32
  }
  func.func @transform_1(%arg0: i32, %arg1: i32) -> (i32, i32, i32) {
    %c1_i32 = arith.constant 1 : i32
    %0 = arith.muli %arg0, %c1_i32 : i32
    %1 = arith.addi %0, %arg1 : i32
    %c0_i32 = arith.constant 0 : i32
    %c0_i32_0 = arith.constant 0 : i32
    %c0_i32_1 = arith.constant 0 : i32
    return %c0_i32, %1, %c0_i32_0 : i32, i32, i32
  }
  func.func @transform_2(%arg0: i32, %arg1: i32) -> (i32, i32, i32, i32) {
    %c0_i32 = arith.constant 0 : i32
    %c0_i32_0 = arith.constant 0 : i32
    %c0_i32_1 = arith.constant 0 : i32
    %c0_i32_2 = arith.constant 0 : i32
    return %arg0, %c0_i32, %c0_i32_0, %c0_i32_1 : i32, i32, i32, i32
  }
  func.func @transform_3(%arg0: i32, %arg1: i32) -> (i32, i32, i32, i32) {
    %c0_i32 = arith.constant 0 : i32
    %c0_i32_0 = arith.constant 0 : i32
    %c0_i32_1 = arith.constant 0 : i32
    %c0_i32_2 = arith.constant 0 : i32
    return %arg0, %c0_i32, %c0_i32_0, %c0_i32_1 : i32, i32, i32, i32
  }
}

</mosaic_0001>

<bundles_post_ra>
// kernel: tpu_custom_call.1
= control target key start
LH: loop header
LB: loop body
LE: loop exit
PB: predicated region body
PF: predicated region fallthrough
CT: control target
= control target key end

     0   :  { %9 = vsyncpa [#allocation5], 0  ;;  %s323_s0 = inlined_call_operand.hbm [shape: f32[2,8,128], index: 0, kind: input, shape index: {}]   ;;  %s324_s1 = inlined_call_operand.hbm [shape: f32[2,8,128], index: 1, kind: input, shape index: {}]   ;;  %s325_s2 = inlined_call_operand.hbm [shape: f32[1,2,8,128], index: 2, kind: output, shape index: {0}]   ;;  %s326_s3 = inlined_call_operand.hbm [shape: f32[1,2,8,128], index: 3, kind: output, shape index: {1}]  }
   0x1   :  { %10 = vsyncpa [#allocation8], 0 }
   0x2   :  { %11 = vsyncpa [#allocation6], 0 }
   0x3   :  { %12 = vsyncpa [#allocation11], 0  ;;  %s230_s12 = smov [#allocation4]   ;;  %s134_s16 = scalar_lea.hbm %s323_s0, 256 }
   0x4   :  { %s21_s13 = sshll.u32 %s230_s12, 4  ;;  %p135_p0 = scmp.ne.s32.totalorder %s323_s0, %s134_s16  ;;  %s22_s13 = int_to_ptr.vmem [resolvable:$true] %s21_s13 }
   0x5   :  { %p138_p1 = scmp.lt.u32.totalorder %s134_s16, %s323_s0 }
   0x7   :  { %p140_p2 = pnand %p138_p1, %p135_p0 }
   0x9   :  { %143 = shalt.err (!%p140_p2)
}
   0xa   :  { %s144_s21 = scalar_lea.vmem %s22_s13, 256  ;;  %p149_p4 = scmp.lt.s32.totalorder %s22_s13, %s22_s13 }
   0xb   :  { %p145_p3 = scmp.ne.s32.totalorder %s22_s13, %s144_s21  ;;  %p150_p5 = scmp.lt.s32.totalorder %s144_s21, %s144_s21 }
   0xd   :  { %p151_p6 = por %p150_p5, %p149_p4 }
   0xf   :  { %p152_p7 = pnand %p151_p6, %p145_p3 }
  0x11   :  { %155 = shalt.err (!%p152_p7)
}
  0x12   :  { %s231_s22 = smov 128   ;;  %s232_s23 = smov 8  }
  0x13   :  { %27 = dma.hbm_to_vmem [thread:$0]  %s323_s0, 256, %s22_s13, [#allocation5], %s231_s22, %s231_s22, %s232_s23  }
  0x14   :  { %s233_s26 = smov [#allocation7]   ;;  %s156_s30 = scalar_lea.hbm %s324_s1, 256 }
  0x15   :  { %s36_s27 = sshll.u32 %s233_s26, 4  ;;  %p157_p8 = scmp.ne.s32.totalorder %s324_s1, %s156_s30  ;;  %s37_s27 = int_to_ptr.vmem [resolvable:$true] %s36_s27 }
  0x16   :  { %p160_p9 = scmp.lt.u32.totalorder %s156_s30, %s324_s1 }
  0x18   :  { %p162_p10 = pnand %p160_p9, %p157_p8 }
  0x1a   :  { %165 = shalt.err (!%p162_p10)
}
  0x1b   :  { %s166_s8 = scalar_lea.vmem %s37_s27, 256  ;;  %p171_p12 = scmp.lt.s32.totalorder %s37_s27, %s37_s27 }
  0x1c   :  { %p167_p11 = scmp.ne.s32.totalorder %s37_s27, %s166_s8  ;;  %p172_p13 = scmp.lt.s32.totalorder %s166_s8, %s166_s8 }
  0x1e   :  { %p173_p0 = por %p172_p13, %p171_p12 }
  0x20   :  { %p174_p1 = pnand %p173_p0, %p167_p11 }
  0x22   :  { %177 = shalt.err (!%p174_p1)
}
  0x23   :  { %42 = dma.hbm_to_vmem [thread:$0]  %s324_s1, 256, %s37_s27, [#allocation8], %s231_s22, %s231_s22, %s232_s23  }
  0x24   :  { %222 = dma.done.wait [#allocation5], 256  }
  0x25   :  { %223 = vsyncadd [#allocation5], 4294967040 }
  0x26   :  { %224 = dma.done.wait [#allocation8], 256  }
  0x27   :  { %225 = vsyncadd [#allocation8], 4294967040  ;;  %s234_s10 = smov [#allocation9]   ;;  %v59_v0 = vld [vmem:[#allocation4] sm:$0xff]  ;;  %v61_v1 = vld [vmem:[#allocation7] sm:$0xff]  ;;  %s235_s12 = smov [#allocation10]  }
  0x28   :  { %s99_s11 = sshll.u32 %s234_s10, 4  ;;  %v60_v2 = vld [vmem:[#allocation4 + $0x8] sm:$0xff]  ;;  %s111_s13 = sshll.u32 %s235_s12, 4  ;;  %v65_v3 = vmul.f32 %v61_v1, %v59_v0  ;;  %v62_v4 = vld [vmem:[#allocation7 + $0x8] sm:$0xff]  ;;  %v75_v5 = vadd.f32 %v61_v1, %v59_v0  ;;  %s100_s11 = int_to_ptr.vmem [resolvable:$true] %s99_s11  ;;  %s286_s13 = int_to_ptr.vmem [resolvable:$true] %s111_s13 }
  0x29   :  { %v66_v6 = vmul.f32 %v62_v4, %v60_v2  ;;  %v76_v7 = vadd.f32 %v62_v4, %v60_v2  ;;  %s178_s1 = scalar_lea.vmem %s100_s11, 256  ;;  %p183_p3 = scmp.lt.s32.totalorder %s100_s11, %s100_s11 }
  0x2a   :  { %88 = vst [vmem:[#allocation9] sm:$0xff] %v65_v3  ;;  %92 = vst [vmem:[#allocation10] sm:$0xff] %v75_v5  ;;  %p179_p2 = scmp.ne.s32.totalorder %s100_s11, %s178_s1  ;;  %p184_p4 = scmp.lt.s32.totalorder %s178_s1, %s178_s1 }
  0x2b   :  { %89 = vst [vmem:[#allocation9 + $0x8] sm:$0xff] %v66_v6  ;;  %93 = vst [vmem:[#allocation10 + $0x8] sm:$0xff] %v76_v7 }
  0x2c   :  { %p185_p5 = por %p184_p4, %p183_p3 }
  0x2e   :  { %p186_p6 = pnand %p185_p5, %p179_p2 }
  0x30   :  { %189 = shalt.err (!%p186_p6)
}
  0x31   :  { %s190_s16 = scalar_lea.hbm %s325_s2, 256 }
  0x32   :  { %p191_p7 = scmp.ne.s32.totalorder %s325_s2, %s190_s16  ;;  %p194_p8 = scmp.lt.u32.totalorder %s190_s16, %s325_s2 }
  0x34   :  { %p196_p9 = pnand %p194_p8, %p191_p7 }
  0x36   :  { %199 = shalt.err (!%p196_p9)
}
  0x37   :  { %105 = dma.vmem_to_hbm [thread:$0]  %s100_s11, 256, %s325_s2, [#allocation6], %s231_s22, %s231_s22, %s232_s23  }
  0x38   :  { %s200_s25 = scalar_lea.vmem %s286_s13, 256  ;;  %p205_p11 = scmp.lt.s32.totalorder %s286_s13, %s286_s13 }
  0x39   :  { %p201_p10 = scmp.ne.s32.totalorder %s286_s13, %s200_s25  ;;  %p206_p12 = scmp.lt.s32.totalorder %s200_s25, %s200_s25 }
  0x3b   :  { %p207_p13 = por %p206_p12, %p205_p11 }
  0x3d   :  { %p208_p0 = pnand %p207_p13, %p201_p10 }
  0x3f   :  { %211 = shalt.err (!%p208_p0)
}
  0x40   :  { %s212_s28 = scalar_lea.hbm %s326_s3, 256 }
  0x41   :  { %p213_p1 = scmp.ne.s32.totalorder %s326_s3, %s212_s28  ;;  %p216_p2 = scmp.lt.u32.totalorder %s212_s28, %s326_s3 }
  0x43   :  { %p218_p3 = pnand %p216_p2, %p213_p1 }
  0x45   :  { %221 = shalt.err (!%p218_p3)
}
  0x46   :  { %117 = dma.vmem_to_hbm [thread:$0]  %s286_s13, 256, %s326_s3, [#allocation11], %s231_s22, %s231_s22, %s232_s23  }
  0x47   :  { %226 = dma.done.wait [#allocation6], 256  }
  0x48   :  { %227 = vsyncadd [#allocation6], 4294967040 }
  0x49   :  { %228 = dma.done.wait [#allocation11], 256  }
  0x4a   :  { %229 = vsyncadd [#allocation11], 4294967040 }
  0x4b   :  { %124 = vsyncpa [#allocation5], 1 }
  0x4c   :  { %125 = vsyncpa [#allocation8], 1 }
  0x4d   :  { %126 = vsyncpa [#allocation6], 1 }
  0x4e   :  { %127 = vsyncpa [#allocation11], 1 }

</bundles_post_ra>
